<compile_context>
chip_gen: v7x
topology: tpu7x:2x2x1
jax: 0.10.0
libtpu: 0.0.40
codegen_flags: <defaults>
</compile_context>

<pallas_src>
import functools

import jax
import jax.numpy as jnp
from jax.experimental import pallas as pl
from jax.experimental.pallas import tpu as pltpu


# ----------------------------------------------------------------------------
# Row-tiling helper (whole-array block at small M; pipelined tiles at large M)
# ----------------------------------------------------------------------------
def _row_tile(m):
    for t in (512, 256, 128):
        if m >= t and m % t == 0:
            return t
    return m


# ----------------------------------------------------------------------------
# Pallas kernels
# ----------------------------------------------------------------------------
def _matmul_kernel(x_ref, w_ref, o_ref):
    o_ref[...] = jnp.dot(x_ref[...], w_ref[...],
                         preferred_element_type=jnp.float32)


def pallas_linear(x2d, w):
    """x2d: (M, K), w: (K, N) (already transposed vs. PyTorch's (out, in))."""
    M, K = x2d.shape
    N = w.shape[1]
    tm = _row_tile(M)
    return pl.pallas_call(
        _matmul_kernel,
        grid=(M // tm,),
        in_specs=[pl.BlockSpec((tm, K), lambda i: (i, 0)),
                  pl.BlockSpec((K, N), lambda i: (0, 0))],
        out_specs=pl.BlockSpec((tm, N), lambda i: (i, 0)),
        out_shape=jax.ShapeDtypeStruct((M, N), jnp.float32),
        compiler_params=pltpu.CompilerParams(
            dimension_semantics=("parallel",)),
    )(x2d, w)


def _fc_add_ln_kernel(x_ref, w_ref, res_ref, g_ref, b_ref, o_ref, *, eps):
    # fused: y = x @ w + residual ; LayerNorm(y) * gamma + beta
    y = jnp.dot(x_ref[...], w_ref[...],
                preferred_element_type=jnp.float32) + res_ref[...]
    mu = jnp.mean(y, axis=-1, keepdims=True)
    var = jnp.mean(jnp.square(y - mu), axis=-1, keepdims=True)
    o_ref[...] = (y - mu) * jax.lax.rsqrt(var + eps) * g_ref[...] + b_ref[...]


def pallas_fc_add_layernorm(x2d, w, res2d, gamma, beta, eps=1e-6):
    """LayerNorm((x2d @ w) + res2d), fused in one kernel."""
    M, K = x2d.shape
    D = w.shape[1]
    tm = _row_tile(M)
    return pl.pallas_call(
        functools.partial(_fc_add_ln_kernel, eps=eps),
        grid=(M // tm,),
        in_specs=[pl.BlockSpec((tm, K), lambda i: (i, 0)),
                  pl.BlockSpec((K, D), lambda i: (0, 0)),
                  pl.BlockSpec((tm, D), lambda i: (i, 0)),
                  pl.BlockSpec((1, D), lambda i: (0, 0)),
                  pl.BlockSpec((1, D), lambda i: (0, 0))],
        out_specs=pl.BlockSpec((tm, D), lambda i: (i, 0)),
        out_shape=jax.ShapeDtypeStruct((M, D), jnp.float32),
        compiler_params=pltpu.CompilerParams(
            dimension_semantics=("parallel",)),
    )(x2d, w, res2d, gamma.reshape(1, D), beta.reshape(1, D))


def _attention_kernel(pq_ref, pk_ref, pv_ref, tdq_ref, tdk_ref, tdv_ref,
                      po_ref, tdo_ref, a1_ref, a23_ref,
                      *, temperature, g, lt):
    inv_t = 1.0 / temperature

    def softmax(s):
        m = jnp.max(s, axis=-1, keepdims=True)
        e = jnp.exp(s - m)
        # exact divide keeps numerics tight vs. the f32 reference
        return e / jnp.sum(e, axis=-1, keepdims=True)

    pq = pq_ref[...] * inv_t
    pk = pk_ref[...]
    pv = pv_ref[...]
    tdq = tdq_ref[...] * inv_t
    tdk = tdk_ref[...]
    tdv = tdv_ref[...]

    # Scores contract last-dim vs last-dim, batched over the leading axis:
    # no explicit K transpose is materialized.
    a1 = softmax(jnp.einsum('gqd,gkd->gqk', pq, pk,
                            preferred_element_type=jnp.float32))
    a23 = softmax(jnp.einsum('gqd,gkd->gqk', tdq, tdk,
                             preferred_element_type=jnp.float32))

    po = jnp.einsum('gqk,gkd->gqd', a1, pv, preferred_element_type=jnp.float32)
    tdo_ref[...] = jnp.einsum('gqk,gkd->gqd', a23, tdv,
                              preferred_element_type=jnp.float32)

    # poi_output[..., 1:, :] += (attn2 + attn3) @ poi_v[..., :-1, :]
    a2p3 = a23[:g] + a23[g:]
    extra = jnp.einsum('gqk,gkd->gqd', a2p3, pv[:, :lt, :],
                       preferred_element_type=jnp.float32)

    # Sliced ref stores (no zeros+concatenate temporary).
    po_ref[:, pl.ds(0, 1), :] = po[:, 0:1, :]
    po_ref[:, pl.ds(1, lt), :] = po[:, 1:, :] + extra

    a1_ref[...] = a1
    a23_ref[...] = a23


def pallas_irr_sdpa(pq, pk, pv, tq, tk, tv, dq, dk, dv, temperature):
    """ScaledDotProductAttention core.  Inputs are (B, H, L, D); one kernel call."""
    B, H, Lp, Dp = pq.shape
    Lt, Dt = tq.shape[2], tq.shape[3]
    Ld, Dd = dq.shape[2], dq.shape[3]
    G = B * H  # all heads batched on the leading block axis

    # If time_dim != distance_dim, zero-pad features so the two streams stack.
    # Zero q/k features do not change scores; padded V columns are sliced off.
    Dtd = max(Dt, Dd)

    def pad_feat(x):
        d = x.shape[-1]
        if d == Dtd:
            return x
        return jnp.pad(x, ((0, 0), (0, 0), (0, 0), (0, Dtd - d)))

    def flat(x):
        return x.reshape(G, x.shape[2], x.shape[3])

    tdq = jnp.concatenate([flat(pad_feat(tq)), flat(pad_feat(dq))], axis=0)
    tdk = jnp.concatenate([flat(pad_feat(tk)), flat(pad_feat(dk))], axis=0)
    tdv = jnp.concatenate([flat(pad_feat(tv)), flat(pad_feat(dv))], axis=0)

    out_shape = (
        jax.ShapeDtypeStruct((G, Lp, Dp), jnp.float32),
        jax.ShapeDtypeStruct((2 * G, Lt, Dtd), jnp.float32),
        jax.ShapeDtypeStruct((G, Lp, Lp), jnp.float32),
        jax.ShapeDtypeStruct((2 * G, Lt, Lt), jnp.float32),
    )
    # Single invocation, whole arrays as VMEM blocks (tiny at these sizes).
    po, tdo, a1, a23 = pl.pallas_call(
        functools.partial(_attention_kernel, temperature=temperature,
                          g=G, lt=Lt),
        out_shape=out_shape,
    )(flat(pq), flat(pk), flat(pv), tdq, tdk, tdv)

    po = po.reshape(B, H, Lp, Dp)
    to = tdo[:G, :, :Dt].reshape(B, H, Lt, Dt)
    do_ = tdo[G:, :, :Dd].reshape(B, H, Ld, Dd)
    a1 = a1.reshape(B, H, Lp, Lp)
    a2 = a23[:G].reshape(B, H, Lt, Lt)
    a3 = a23[G:].reshape(B, H, Ld, Ld)
    return po, to, do_, a1, a2, a3


# ----------------------------------------------------------------------------
# IrrAttention forward (glue in JAX, hot paths in Pallas)
# ----------------------------------------------------------------------------
def init_params(key, n_head, d_model, poi_dim, time_dim, distance_dim):
    names_and_dims = [
        ("poi_w_q", d_model, n_head * poi_dim),
        ("poi_w_k", d_model, n_head * poi_dim),
        ("poi_w_v", d_model, n_head * poi_dim),
        ("time_w_q", d_model, n_head * time_dim),
        ("time_w_k", d_model, n_head * time_dim),
        ("time_w_v", d_model, n_head * time_dim),
        ("distance_w_q", d_model, n_head * distance_dim),
        ("distance_w_k", d_model, n_head * distance_dim),
        ("distance_w_v", d_model, n_head * distance_dim),
        ("q_fc", n_head * poi_dim, d_model),
        ("iq_fc", n_head * time_dim, d_model),
        ("dq_fc", n_head * distance_dim, d_model),
    ]
    keys = jax.random.split(key, len(names_and_dims))
    params = {}
    for k, (name, fan_in, fan_out) in zip(keys, names_and_dims):
        bound = 1.0 / (fan_in ** 0.5)
        # stored as (in, out): y = x @ W   (== PyTorch x @ weight.T)
        params[name] = jax.random.uniform(
            k, (fan_in, fan_out), jnp.float32, -bound, bound)
    for ln in ("ln_q", "ln_iq", "ln_dq"):
        params[ln + "_g"] = jnp.ones((d_model,), jnp.float32)
        params[ln + "_b"] = jnp.zeros((d_model,), jnp.float32)
    return params


def irr_attention_forward(params, poi_inputs, time_interval, distance_interval,
                          n_head, poi_dim, time_dim, distance_dim):
    B, Lp, D = poi_inputs.shape
    Lt = time_interval.shape[1]
    Ld = distance_interval.shape[1]
    H = n_head

    # Fused projection weights (in practice pre-fuse once outside the forward).
    w_poi_qkv = jnp.concatenate(
        [params["poi_w_q"], params["poi_w_k"], params["poi_w_v"]], axis=1)
    w_time_qk = jnp.concatenate(
        [params["time_w_q"], params["time_w_k"]], axis=1)
    w_dist_qk = jnp.concatenate(
        [params["distance_w_q"], params["distance_w_k"]], axis=1)

    # --- fused projections: one matmul per distinct input ---
    poi_qkv = pallas_linear(poi_inputs.reshape(B * Lp, D), w_poi_qkv)
    poi_qkv = poi_qkv.reshape(B, Lp, 3, H, poi_dim).transpose(2, 0, 3, 1, 4)
    pq, pk, pv = poi_qkv[0], poi_qkv[1], poi_qkv[2]          # (B, H, Lp, pd)

    poi_merge = poi_inputs[:, :-1, :] + poi_inputs[:, 1:, :]
    t_in = (poi_merge + time_interval).reshape(B * Lt, D)
    d_in = (poi_merge + distance_interval).reshape(B * Ld, D)

    t_qk = pallas_linear(t_in, w_time_qk) \
        .reshape(B, Lt, 2, H, time_dim).transpose(2, 0, 3, 1, 4)
    tq, tk = t_qk[0], t_qk[1]                                 # (B, H, Lt, td)
    tv = pallas_linear(time_interval.reshape(B * Lt, D), params["time_w_v"]) \
        .reshape(B, Lt, H, time_dim).transpose(0, 2, 1, 3)

    d_qk = pallas_linear(d_in, w_dist_qk) \
        .reshape(B, Ld, 2, H, distance_dim).transpose(2, 0, 3, 1, 4)
    dq, dk = d_qk[0], d_qk[1]
    dv = pallas_linear(distance_interval.reshape(B * Ld, D),
                       params["distance_w_v"]) \
        .reshape(B, Ld, H, distance_dim).transpose(0, 2, 1, 3)

    temperature = poi_dim ** 0.5
    po, to, do_, a1, a2, a3 = pallas_irr_sdpa(
        pq, pk, pv, tq, tk, tv, dq, dk, dv, temperature)

    # back to (B*L, H*Dh) for the output projections
    po2 = po.transpose(0, 2, 1, 3).reshape(B * Lp, H * poi_dim)
    to2 = to.transpose(0, 2, 1, 3).reshape(B * Lt, H * time_dim)
    do2 = do_.transpose(0, 2, 1, 3).reshape(B * Ld, H * distance_dim)

    # fused fc + residual add + layernorm (one kernel per stream)
    po_out = pallas_fc_add_layernorm(
        po2, params["q_fc"], poi_inputs.reshape(B * Lp, D),
        params["ln_q_g"], params["ln_q_b"]).reshape(B, Lp, D)
    to_out = pallas_fc_add_layernorm(
        to2, params["iq_fc"], time_interval.reshape(B * Lt, D),
        params["ln_iq_g"], params["ln_iq_b"]).reshape(B, Lt, D)
    do_out = pallas_fc_add_layernorm(
        do2, params["dq_fc"], distance_interval.reshape(B * Ld, D),
        params["ln_dq_g"], params["ln_dq_b"]).reshape(B, Ld, D)

    return po_out, to_out, do_out, a1, a2, a3


# ----------------------------------------------------------------------------
# Pure-JAX reference (mirrors the PyTorch forward) for correctness checking
# ----------------------------------------------------------------------------
def reference_forward(params, poi_inputs, time_interval, distance_interval,
                      n_head, poi_dim, time_dim, distance_dim):
    B, Lp, D = poi_inputs.shape
    Lt = time_interval.shape[1]
    Ld = distance_interval.shape[1]
    T = poi_dim ** 0.5

    def heads(y, L, Dh):
        return y.reshape(B, L, n_head, Dh).transpose(0, 2, 1, 3)

    pq = heads(poi_inputs @ params["poi_w_q"], Lp, poi_dim)
    pk = heads(poi_inputs @ params["poi_w_k"], Lp, poi_dim)
    pv = heads(poi_inputs @ params["poi_w_v"], Lp, poi_dim)
    merge = poi_inputs[:, :-1] + poi_inputs[:, 1:]
    tq = heads((merge + time_interval) @ params["time_w_q"], Lt, time_dim)
    tk = heads((merge + time_interval) @ params["time_w_k"], Lt, time_dim)
    tv = heads(time_interval @ params["time_w_v"], Lt, time_dim)
    dq = heads((merge + distance_interval) @ params["distance_w_q"], Ld, distance_dim)
    dk = heads((merge + distance_interval) @ params["distance_w_k"], Ld, distance_dim)
    dv = heads(distance_interval @ params["distance_w_v"], Ld, distance_dim)

    a1 = jax.nn.softmax((pq / T) @ jnp.swapaxes(pk, 2, 3), axis=-1)
    a2 = jax.nn.softmax((tq / T) @ jnp.swapaxes(tk, 2, 3), axis=-1)
    a3 = jax.nn.softmax((dq / T) @ jnp.swapaxes(dk, 2, 3), axis=-1)
    po = a1 @ pv
    to = a2 @ tv
    do_ = a3 @ dv
    po = po.at[..., 1:, :].add(a2 @ pv[..., :-1, :])
    po = po.at[..., 1:, :].add(a3 @ pv[..., :-1, :])

    po = po.transpose(0, 2, 1, 3).reshape(B, Lp, -1) @ params["q_fc"]
    to = to.transpose(0, 2, 1, 3).reshape(B, Lt, -1) @ params["iq_fc"]
    do_ = do_.transpose(0, 2, 1, 3).reshape(B, Ld, -1) @ params["dq_fc"]

    def ln(x, res, g, b):
        x = x + res
        mu = x.mean(-1, keepdims=True)
        var = jnp.square(x - mu).mean(-1, keepdims=True)
        return (x - mu) / jnp.sqrt(var + 1e-6) * g + b

    po = ln(po, poi_inputs, params["ln_q_g"], params["ln_q_b"])
    to = ln(to, time_interval, params["ln_iq_g"], params["ln_iq_b"])
    do_ = ln(do_, distance_interval, params["ln_dq_g"], params["ln_dq_b"])
    return po, to, do_, a1, a2, a3


# ----------------------------------------------------------------------------
if __name__ == "__main__":
    n_head, d_model = 2, 32
    poi_dim = time_dim = distance_dim = 8
    B, Lp = 2, 8
    Lt = Ld = Lp - 1  # poi_merge shortens the sequence by one

    key = jax.random.PRNGKey(0)
    k1, k2, k3, kp = jax.random.split(key, 4)
    poi_inputs = jax.random.normal(k1, (B, Lp, d_model), jnp.float32)
    time_interval = jax.random.normal(k2, (B, Lt, d_model), jnp.float32)
    distance_interval = jax.random.normal(k3, (B, Ld, d_model), jnp.float32)

    params = init_params(kp, n_head, d_model, poi_dim, time_dim, distance_dim)

    outs = irr_attention_forward(params, poi_inputs, time_interval,
                                 distance_interval, n_head, poi_dim,
                                 time_dim, distance_dim)
    outs = jax.block_until_ready(outs)

    refs = reference_forward(params, poi_inputs, time_interval,
                             distance_interval, n_head, poi_dim,
                             time_dim, distance_dim)
    names = ["poi_output", "time_output", "distance_output",
             "attn1", "attn2", "attn3"]
    for name, o, r in zip(names, outs, refs):
        assert o.shape == r.shape, (name, o.shape, r.shape)
        assert jnp.allclose(o, r, atol=2e-3, rtol=2e-3), (
            name, float(jnp.max(jnp.abs(o - r))))

    print("KERNEL_OK")
</pallas_src>

<mosaic_0001>
module attributes {stable_mosaic.version = 11 : i64} {
  func.func @_matmul_kernel(%arg0: i32, %arg1: memref<16x32xf32, #tpu.memory_space<vmem>>, %arg2: memref<32x48xf32, #tpu.memory_space<vmem>>, %arg3: memref<16x48xf32, #tpu.memory_space<vmem>>) attributes {dimension_semantics = [#tpu.dimension_semantics<parallel>], iteration_bounds = array<i64: 1>, scalar_prefetch = 0 : i64, scratch_operands = 0 : i64, tpu.core_type = #tpu.core_type<tc>, window_params = [{transform_indices = @transform_0, window_bounds = array<i64: 16, 32>}, {pipeline_mode = #tpu.pipeline_mode<synchronous>, transform_indices = @transform_1, window_bounds = array<i64: 32, 48>}, {transform_indices = @transform_2, window_bounds = array<i64: 16, 48>}]} {
    %c0 = arith.constant 0 : index
    %c0_0 = arith.constant 0 : index
    %0 = vector.load %arg1[%c0, %c0_0] : memref<16x32xf32, #tpu.memory_space<vmem>>, vector<16x32xf32>
    %c0_1 = arith.constant 0 : index
    %c0_2 = arith.constant 0 : index
    %1 = vector.load %arg2[%c0_1, %c0_2] : memref<32x48xf32, #tpu.memory_space<vmem>>, vector<32x48xf32>
    %cst = arith.constant dense<0.000000e+00> : vector<16x48xf32>
    %2 = tpu.matmul %0, %1, %cst {dimension_numbers = #tpu.dot_dimension_numbers<[1], [0], [0], [1], [0, 0, 1, 1], [], []>} : vector<16x32xf32>, vector<32x48xf32>, vector<16x48xf32> -> vector<16x48xf32>
    %c0_3 = arith.constant 0 : index
    %c0_4 = arith.constant 0 : index
    %3 = vector.load %arg3[%c0_3, %c0_4] : memref<16x48xf32, #tpu.memory_space<vmem>>, vector<16x48xf32>
    tpu.vector_store %arg3[%c0_3, %c0_4], %2 {strides = array<i32>} : memref<16x48xf32, #tpu.memory_space<vmem>>, vector<16x48xf32>,
    return
  }
  func.func @transform_0(%arg0: i32) -> (i32, i32) {
    %c0_i32 = arith.constant 0 : i32
    %c0_i32_0 = arith.constant 0 : i32
    return %arg0, %c0_i32 : i32, i32
  }
  func.func @transform_1(%arg0: i32) -> (i32, i32) {
    %c0_i32 = arith.constant 0 : i32
    %c0_i32_0 = arith.constant 0 : i32
    %c0_i32_1 = arith.constant 0 : i32
    return %c0_i32, %c0_i32_0 : i32, i32
  }
  func.func @transform_2(%arg0: i32) -> (i32, i32) {
    %c0_i32 = arith.constant 0 : i32
    %c0_i32_0 = arith.constant 0 : i32
    return %arg0, %c0_i32 : i32, i32
  }
}

</mosaic_0001>

<bundles_post_ra>
// kernel: tpu_custom_call.1
= control target key start
LH: loop header
LB: loop body
LE: loop exit
PB: predicated region body
PF: predicated region fallthrough
CT: control target
= control target key end

     0   :  { %7 = vsyncpa [#allocation3], 0  ;;  %s318_s0 = inlined_call_operand.hbm [shape: f32[16,32], index: 0, kind: input, shape index: {}]   ;;  %s319_s1 = inlined_call_operand.hbm [shape: f32[32,48], index: 1, kind: input, shape index: {}]   ;;  %s320_s2 = inlined_call_operand.hbm [shape: f32[16,48], index: 2, kind: output, shape index: {}]  }
   0x1   :  { %8 = vsyncpa [#allocation6], 0 }
   0x2   :  { %9 = vsyncpa [#allocation4], 0  ;;  %s253_s9 = smov [#allocation2]   ;;  %s181_s13 = scalar_lea.hbm %s318_s0, 256 }
   0x3   :  { %s15_s10 = sshll.u32 %s253_s9, 4  ;;  %p182_p0 = scmp.ne.s32.totalorder %s318_s0, %s181_s13  ;;  %s16_s10 = int_to_ptr.vmem [resolvable:$true] %s15_s10 }
   0x4   :  { %p185_p1 = scmp.lt.u32.totalorder %s181_s13, %s318_s0 }
   0x6   :  { %p187_p2 = pnand %p185_p1, %p182_p0 }
   0x8   :  { %190 = shalt.err (!%p187_p2)
}
   0x9   :  { %s191_s18 = scalar_lea.vmem %s16_s10, 256  ;;  %p196_p4 = scmp.lt.s32.totalorder %s16_s10, %s16_s10 }
   0xa   :  { %p192_p3 = scmp.ne.s32.totalorder %s16_s10, %s191_s18  ;;  %p197_p5 = scmp.lt.s32.totalorder %s191_s18, %s191_s18 }
   0xc   :  { %p198_p6 = por %p197_p5, %p196_p4 }
   0xe   :  { %p199_p7 = pnand %p198_p6, %p192_p3 }
  0x10   :  { %202 = shalt.err (!%p199_p7)
}
  0x11   :  { %s254_s19 = smov 128   ;;  %s255_s20 = smov 8  }
  0x12   :  { %21 = dma.hbm_to_vmem [thread:$0]  %s318_s0, 256, %s16_s10, [#allocation3], %s254_s19, %s254_s19, %s255_s20  }
  0x13   :  { %s256_s23 = smov [#allocation5]   ;;  %s203_s27 = scalar_lea.hbm %s319_s1, 512 }
  0x14   :  { %s27_s24 = sshll.u32 %s256_s23, 4  ;;  %p204_p8 = scmp.ne.s32.totalorder %s319_s1, %s203_s27  ;;  %s28_s24 = int_to_ptr.vmem [resolvable:$true] %s27_s24 }
  0x15   :  { %p207_p9 = scmp.lt.u32.totalorder %s203_s27, %s319_s1 }
  0x17   :  { %p209_p10 = pnand %p207_p9, %p204_p8 }
  0x19   :  { %212 = shalt.err (!%p209_p10)
}
  0x1a   :  { %s213_s4 = scalar_lea.vmem %s28_s24, 512  ;;  %p218_p12 = scmp.lt.s32.totalorder %s28_s24, %s28_s24 }
  0x1b   :  { %p214_p11 = scmp.ne.s32.totalorder %s28_s24, %s213_s4  ;;  %p219_p13 = scmp.lt.s32.totalorder %s213_s4, %s213_s4 }
  0x1d   :  { %p220_p0 = por %p219_p13, %p218_p12 }
  0x1f   :  { %p221_p1 = pnand %p220_p0, %p214_p11 }
  0x21   :  { %224 = shalt.err (!%p221_p1)
}
  0x22   :  { %33 = dma.hbm_to_vmem [thread:$0]  %s319_s1, 512, %s28_s24, [#allocation6], %s254_s19, %s254_s19, %s255_s20  }
  0x23   :  { %247 = dma.done.wait [#allocation3], 256  }
  0x24   :  { %248 = vsyncadd [#allocation3], 4294967040 }
  0x25   :  { %249 = dma.done.wait [#allocation6], 512  }
  0x26   :  { %250 = vsyncadd [#allocation6], 4294966784  ;;  %vm46_vm0 = vcmask 261120   ;;  %v42_v0 = vld [vmem:[#allocation5] sm:$0xff]  ;;  %v43_v1 = vld [vmem:[#allocation5 + $0x8] sm:$0xff]  ;;  %s257_s1 = smov [#allocation7]  }
  0x27   :  { %v44_v2 = vld [vmem:[#allocation5 + $0x10] sm:$0xff]  ;;  %v168_v3 = vpack.c.bf16 %v43_v1, %v42_v0  ;;  %v45_v4 = vld [vmem:[#allocation5 + $0x18] sm:$0xff]  ;;  %s136_s6 = sshll.u32 %s257_s1, 4  ;;  %vm128_vm1 = vcmask 392192   ;;  %s137_s6 = int_to_ptr.vmem [resolvable:$true] %s136_s6 }
  0x28   :  { %v40_v5 = vld [vmem:[#allocation2] sm:$0xff]  ;;  %v172_v6 = vpack.c.bf16 %v45_v4, %v44_v2  ;;  %v41_v7 = vld [vmem:[#allocation2 + $0x8] sm:$0xff]  ;;  %s225_s7 = scalar_lea.vmem %s137_s6, 256  ;;  %p230_p3 = scmp.lt.s32.totalorder %s137_s6, %s137_s6 }
  0x29   :  { %165 = vmatprep.mubr.msk.f32.mxu0 %vm46_vm0, %v40_v5  ;;  %169 = vmatprep.subr.bf16.mxu0 %v168_v3  ;;  %p226_p2 = scmp.ne.s32.totalorder %s137_s6, %s225_s7  ;;  %p231_p4 = scmp.lt.s32.totalorder %s225_s7, %s225_s7 }
  0x2a   :  { %171 = vmatpush3.bf16.msra.mxu0 %v168_v3 }
  0x2b   :  { %173 = vmatprep.subr.bf16.mxu0 %v172_v6  ;;  %p232_p5 = por %p231_p4, %p230_p3 }
  0x2d   :  { %p233_p6 = pnand %p232_p5, %p226_p2 }
  0x2e   :  { %175 = vmatpush3.bf16.msra.mxu0 %v172_v6 }
  0x31   :  { %166 = vmatmul.mubr.msk.f32.vlgmr.msra.gmra.mrb[0].mxu0 %vm46_vm0, %v41_v7 }
 0x104   :  { %v167_v8 = vpop.f32.mrb[0].mxu0 }
 0x105   :  { %130 = vst.msk [vmem:[#allocation7 + $0x8] sm:$0xff] %vm128_vm1, %v167_v8  ;;  %v119_v9 = vpop.f32.mrb[1].mxu0 }
 0x106   :  { %129 = vst.msk [vmem:[#allocation7] sm:$0xff] %vm128_vm1, %v119_v9 }
 0x107   :  { %236 = shalt.err (!%p233_p6)
}
 0x108   :  { %s237_s10 = scalar_lea.hbm %s320_s2, 256 }
 0x109   :  { %p238_p7 = scmp.ne.s32.totalorder %s320_s2, %s237_s10  ;;  %p241_p8 = scmp.lt.u32.totalorder %s237_s10, %s320_s2 }
 0x10b   :  { %p243_p9 = pnand %p241_p8, %p238_p7 }
 0x10d   :  { %246 = shalt.err (!%p243_p9)
}
 0x10e   :  { %142 = dma.vmem_to_hbm [thread:$0]  %s137_s6, 256, %s320_s2, [#allocation4], %s254_s19, %s254_s19, %s255_s20  }
 0x10f   :  { %251 = dma.done.wait [#allocation4], 256  }
 0x110   :  { %252 = vsyncadd [#allocation4], 4294967040 }
 0x111   :  { %146 = vsyncpa [#allocation3], 1 }
 0x112   :  { %147 = vsyncpa [#allocation6], 1 }
 0x113   :  { %148 = vsyncpa [#allocation4], 1 }

</bundles_post_ra>
